<compile_context>
chip_gen: v7x
topology: tpu7x:2x2x1
jax: 0.10.0
libtpu: 0.0.40
codegen_flags: <defaults>
</compile_context>

<pallas_src>
import math

import jax
import jax.numpy as jnp
from jax.experimental import pallas as pl
from jax.experimental.pallas import tpu as pltpu


_NEG_INF = -1e30   # large finite negative: scores stay f32, no (-inf)-(-inf) NaNs


def _round_up(n, m):
    return ((n + m - 1) // m) * m


def _pick_tile(n, candidates):
    """Largest candidate dividing n (n is always a multiple of 128 here)."""
    for c in candidates:
        if n % c == 0:
            return c
    return n


def _vmem_limit_bytes():
    """Generation-aware scoped-VMEM budget (128 MiB parts vs v7x's 64 MiB/TC)."""
    cap = 64 * 1024 * 1024
    try:
        cap = int(pltpu.get_tpu_info().vmem_capacity_bytes)
    except Exception:
        pass
    return int(min(100 * 1024 * 1024, (cap * 5) // 8))


# --------------------------------------------------------------------------------------
# Kernel 1: fused QKV projection, head-major output, 1/sqrt(D) folded into the q weights.
# --------------------------------------------------------------------------------------
def _qkv_proj_kernel(x_ref, w_ref, q_ref, k_ref, v_ref):
    # x_ref: (1, Ts, H)   w_ref: (nh, H, 3D) fully resident   q/k/v_ref: (1, 1, Ts, D)
    h = pl.program_id(2)
    d = q_ref.shape[-1]
    x = x_ref[0]                                              # (Ts, H), compute dtype
    w = w_ref[h]                                              # (H, 3D), dynamic head index
    qkv = jnp.dot(x, w, preferred_element_type=jnp.float32)   # (Ts, 3D), f32 accumulation
    q_ref[0, 0] = qkv[:, :d].astype(q_ref.dtype)
    k_ref[0, 0] = qkv[:, d:2 * d].astype(k_ref.dtype)
    v_ref[0, 0] = qkv[:, 2 * d:].astype(v_ref.dtype)


# --------------------------------------------------------------------------------------
# Kernel 2: causal flash attention fused with the output projection.
#   grid = (B, q_tiles, heads, kv_tiles); heads and kv are reduction axes.
# --------------------------------------------------------------------------------------
def _flash_attn_oproj_kernel(q_ref, k_ref, v_ref, wo_ref, o_ref,
                             m_ref, l_ref, acc_ref, acco_ref):
    # q_ref: (1,1,Tq,D)   k/v_ref: (1,1,Tkv,D)   wo_ref: (nh,D,H) resident
    # o_ref: (1,Tq,H)     m/l: (Tq,1) f32   acc: (Tq,D) f32   acco: (Tq,H) f32
    qi = pl.program_id(1)
    h = pl.program_id(2)
    ki = pl.program_id(3)
    n_h = pl.num_programs(2)
    n_kv = pl.num_programs(3)
    tq = q_ref.shape[2]
    tkv = k_ref.shape[2]

    @pl.when((h == 0) & (ki == 0))
    def _init_out():
        acco_ref[...] = jnp.zeros(acco_ref.shape, acco_ref.dtype)

    @pl.when(ki == 0)
    def _init_head():
        m_ref[...] = jnp.full(m_ref.shape, _NEG_INF, m_ref.dtype)
        l_ref[...] = jnp.zeros(l_ref.shape, l_ref.dtype)
        acc_ref[...] = jnp.zeros(acc_ref.shape, acc_ref.dtype)

    q_start = qi * tq
    kv_start = ki * tkv
    # Uses the *unclamped* ki: on clamped/skipped steps `visible` is False.
    visible = kv_start <= q_start + (tq - 1)         # some (row, col) pair unmasked
    interior = kv_start + (tkv - 1) <= q_start       # every col <= every row: no mask

    def _step(masked):
        q = q_ref[0, 0]                               # (Tq, D), pre-scaled by 1/sqrt(D)
        k = k_ref[0, 0]                               # (Tkv, D)
        v = v_ref[0, 0]                               # (Tkv, D)

        # q @ k^T without an explicit transpose: contract both operands on the last dim.
        s = jax.lax.dot_general(q, k, (((1,), (1,)), ((), ())),
                                preferred_element_type=jnp.float32)   # (Tq, Tkv) f32
        if masked:
            rows = q_start + jax.lax.broadcasted_iota(jnp.int32, (tq, 1), 0)
            cols = kv_start + jax.lax.broadcasted_iota(jnp.int32, (1, tkv), 1)
            s = jnp.where(rows >= cols, s, _NEG_INF)

        m_prev = m_ref[...]                                                # (Tq, 1)
        m_curr = jnp.maximum(m_prev, jnp.max(s, axis=-1, keepdims=True))   # (Tq, 1)
        alpha = jnp.exp(m_prev - m_curr)                                   # (Tq, 1)
        p = jnp.exp(s - m_curr)                                            # (Tq, Tkv)

        l_ref[...] = alpha * l_ref[...] + jnp.sum(p, axis=-1, keepdims=True)
        acc_ref[...] = alpha * acc_ref[...] + jax.lax.dot_general(
            p.astype(v.dtype), v, (((1,), (0,)), ((), ())),
            preferred_element_type=jnp.float32)
        m_ref[...] = m_curr

    @pl.when(interior)
    def _interior_tile():
        _step(masked=False)

    @pl.when(visible & jnp.logical_not(interior))
    def _diagonal_tile():
        _step(masked=True)

    # Per-head finalize: fold 1/l and this head's Wo slab into the (Tq, H) accumulator.
    @pl.when(ki == n_kv - 1)
    def _finalize_head():
        l = l_ref[...]
        inv_l = pl.reciprocal(l, approx=True)           # EUP slot
        inv_l = inv_l * (2.0 - l * inv_l)               # one Newton step -> full precision
        attn = (acc_ref[...] * inv_l).astype(wo_ref.dtype)        # (Tq, D)
        acco_ref[...] += jnp.dot(attn, wo_ref[h],
                                 preferred_element_type=jnp.float32)

    @pl.when((h == n_h - 1) & (ki == n_kv - 1))
    def _store():
        o_ref[0] = acco_ref[...].astype(o_ref.dtype)


# --------------------------------------------------------------------------------------
# Wrapper
# --------------------------------------------------------------------------------------
def causal_self_attention(x, wqkv, wo, *, num_heads, compute_dtype=None):
    """x: (B, S, H); wqkv: (H, 3H); wo: (H, H). Returns (B, S, H) in x.dtype.

    compute_dtype: optional MXU operand dtype (e.g. jnp.bfloat16); accumulation stays f32.
    """
    B, S, H = x.shape
    assert H % num_heads == 0, "hidden_dim must be divisible by num_heads"
    D = H // num_heads
    out_dtype = x.dtype
    cdtype = jnp.dtype(compute_dtype) if compute_dtype is not None else jnp.dtype(out_dtype)
    itemsize = jnp.dtype(cdtype).itemsize
    vmem_limit = _vmem_limit_bytes()

    # ---- one-time host-side weight layout ----
    # Per-head (H, 3D) slabs [q | k | v]; q pre-scaled by 1/sqrt(D) (in f32, then cast).
    scale = 1.0 / math.sqrt(D)
    wqkv_f32 = wqkv.astype(jnp.float32)
    wq = wqkv_f32[:, :H].reshape(H, num_heads, D) * scale
    wk = wqkv_f32[:, H:2 * H].reshape(H, num_heads, D)
    wv = wqkv_f32[:, 2 * H:].reshape(H, num_heads, D)
    w_heads = jnp.transpose(jnp.concatenate([wq, wk, wv], axis=-1), (1, 0, 2)).astype(cdtype)
    wo_heads = wo.reshape(num_heads, D, H).astype(cdtype)               # (nh, D, H)

    # ---- pad sequence to a multiple of 128 (padding is inert under the causal mask) ----
    S_pad = _round_up(S, 128)
    x_p = x if S_pad == S else jnp.pad(x, ((0, 0), (0, S_pad - S), (0, 0)))
    x_p = x_p.astype(cdtype)

    # ---- tile sizes (S_pad is a multiple of 128 => no monolithic fallback) ----
    s_tile = _pick_tile(S_pad, (512, 256, 128))
    tq = _pick_tile(S_pad, (512, 256, 128))
    tkv = min(tq, _pick_tile(S_pad, (256, 128)))      # tkv <= tq: less masked diagonal work
    n_s, n_q, n_kv = S_pad // s_tile, S_pad // tq, S_pad // tkv

    # ---- 1) QKV projection, head-major outputs ----
    head_shape = jax.ShapeDtypeStruct((B, num_heads, S_pad, D), cdtype)
    q, k, v = pl.pallas_call(
        _qkv_proj_kernel,
        out_shape=(head_shape, head_shape, head_shape),
        grid_spec=pltpu.PrefetchScalarGridSpec(
            num_scalar_prefetch=0,
            grid=(B, n_s, num_heads),
            in_specs=[
                pl.BlockSpec((1, s_tile, H), lambda b, si, h: (b, si, 0)),
                # Fully VMEM-resident weight (constant block index => fetched once).
                # TODO(synk): for very large H on v7x (64 MiB VMEM) tile this per head
                # instead of keeping the full 3*H*H slab resident.
                pl.BlockSpec((num_heads, H, 3 * D), lambda b, si, h: (0, 0, 0)),
            ],
            out_specs=[
                pl.BlockSpec((1, 1, s_tile, D), lambda b, si, h: (b, h, si, 0)),
                pl.BlockSpec((1, 1, s_tile, D), lambda b, si, h: (b, h, si, 0)),
                pl.BlockSpec((1, 1, s_tile, D), lambda b, si, h: (b, h, si, 0)),
            ],
        ),
        compiler_params=pltpu.CompilerParams(
            dimension_semantics=("parallel", "parallel", "parallel"),
            vmem_limit_bytes=vmem_limit),
        cost_estimate=pl.CostEstimate(
            flops=int(6 * B * S_pad * H * H),
            transcendentals=0,
            bytes_accessed=int((4 * B * S_pad * H + 3 * H * H) * itemsize)),
    )(x_p, w_heads)

    # ---- 2) causal flash attention fused with the output projection ----
    def _last_visible_kv(qi):
        return (qi * tq + tq - 1) // tkv

    out_p = pl.pallas_call(
        _flash_attn_oproj_kernel,
        out_shape=jax.ShapeDtypeStruct((B, S_pad, H), out_dtype),
        grid_spec=pltpu.PrefetchScalarGridSpec(
            num_scalar_prefetch=0,
            grid=(B, n_q, num_heads, n_kv),
            in_specs=[
                pl.BlockSpec((1, 1, tq, D), lambda b, qi, h, ki: (b, h, qi, 0)),
                # Clamp K/V block indices to the last causally-visible block: skipped
                # steps revisit the same block, so no DMA is issued for them.
                pl.BlockSpec((1, 1, tkv, D),
                             lambda b, qi, h, ki: (b, h, jnp.minimum(ki, _last_visible_kv(qi)), 0)),
                pl.BlockSpec((1, 1, tkv, D),
                             lambda b, qi, h, ki: (b, h, jnp.minimum(ki, _last_visible_kv(qi)), 0)),
                # Fully resident per-head output-projection weight (H*H elements).
                pl.BlockSpec((num_heads, D, H), lambda b, qi, h, ki: (0, 0, 0)),
            ],
            # Lane-dense (., H) output, written once per (b, qi) at the final (h, ki) step.
            out_specs=pl.BlockSpec((1, tq, H), lambda b, qi, h, ki: (b, qi, 0)),
            scratch_shapes=[
                pltpu.VMEM((tq, 1), jnp.float32),    # m: running row max
                pltpu.VMEM((tq, 1), jnp.float32),    # l: running softmax denominator
                pltpu.VMEM((tq, D), jnp.float32),    # per-head unnormalized accumulator
                pltpu.VMEM((tq, H), jnp.float32),    # cross-head output accumulator
            ],
        ),
        # B and q-tiles stay "parallel" for megacore sharding (v7x: 2 TCs per chip).
        compiler_params=pltpu.CompilerParams(
            dimension_semantics=("parallel", "parallel", "arbitrary", "arbitrary"),
            vmem_limit_bytes=vmem_limit),
        cost_estimate=pl.CostEstimate(
            flops=int(2 * B * num_heads * S_pad * S_pad * D + 2 * B * S_pad * H * H),
            transcendentals=int(B * num_heads * S_pad * S_pad // 2),
            bytes_accessed=int((4 * B * S_pad * H + H * H) * itemsize)),
    )(q, k, v, wo_heads)

    return out_p if S_pad == S else out_p[:, :S, :]


# --------------------------------------------------------------------------------------
# Pure-JAX reference mirroring the PyTorch forward (dropout p=0), full precision.
# --------------------------------------------------------------------------------------
def _reference(x, wqkv, wo, num_heads):
    B, S, H = x.shape
    D = H // num_heads
    hp = jax.lax.Precision.HIGHEST
    qkv = jnp.matmul(x, wqkv, precision=hp)                 # (B, S, 3H)
    qkv = qkv.reshape(B, S, 3, num_heads, D)
    q, k, v = qkv[:, :, 0], qkv[:, :, 1], qkv[:, :, 2]      # (B, S, nh, D)
    q = q.transpose(0, 2, 1, 3)                             # (B, nh, S, D)
    k = k.transpose(0, 2, 1, 3)
    v = v.transpose(0, 2, 1, 3)
    s = jnp.einsum("bhqd,bhkd->bhqk", q, k, precision=hp) / math.sqrt(D)
    mask = jnp.tril(jnp.ones((S, S), dtype=bool))
    s = jnp.where(mask, s, -jnp.inf)
    p = jax.nn.softmax(s, axis=-1)
    o = jnp.einsum("bhqk,bhkd->bhqd", p, v, precision=hp)
    o = o.transpose(0, 2, 1, 3).reshape(B, S, H)
    return jnp.matmul(o, wo, precision=hp)


if __name__ == "__main__":
    def _max_err(a, b):
        return float(jnp.max(jnp.abs(a.astype(jnp.float32) - b.astype(jnp.float32))))

    configs = [
        (2, 8, 32, 4),        # tiny module-spec shapes (single padded tile)
        (1, 1024, 128, 2),    # multi-tile: online softmax, causal DMA skip, head reduction
    ]
    for (B, S, H, nh) in configs:
        key = jax.random.PRNGKey(0)
        kx, kq, ko = jax.random.split(key, 3)

        x = jax.random.normal(kx, (B, S, H), dtype=jnp.float32)
        # nn.Linear(H, 3H, bias=False).weight is (3H, H); kernels take its transpose.
        wqkv = (jax.random.normal(kq, (3 * H, H), dtype=jnp.float32) / math.sqrt(H)).T
        wo = (jax.random.normal(ko, (H, H), dtype=jnp.float32) / math.sqrt(H)).T

        ref = _reference(x, wqkv, wo, nh)

        out = jax.block_until_ready(causal_self_attention(x, wqkv, wo, num_heads=nh))
        assert out.shape == (B, S, H)
        assert jnp.allclose(out, ref, atol=3e-3, rtol=3e-3), (
            f"f32 mismatch (B={B},S={S},H={H},nh={nh}) max abs err {_max_err(out, ref)}")

        if S >= 1024:
            # bf16 MXU-operand path (f32 accumulation); looser tolerance vs f32 reference.
            out_bf16 = jax.block_until_ready(
                causal_self_attention(x, wqkv, wo, num_heads=nh,
                                      compute_dtype=jnp.bfloat16))
            assert out_bf16.shape == (B, S, H)
            assert jnp.allclose(out_bf16, ref, atol=8e-2, rtol=8e-2), (
                f"bf16 mismatch (B={B},S={S},H={H},nh={nh}) max abs err {_max_err(out_bf16, ref)}")

    print("KERNEL_OK")
</pallas_src>

<mosaic_0001>
module attributes {stable_mosaic.version = 11 : i64} {
  func.func @_qkv_proj_kernel(%arg0: i32, %arg1: i32, %arg2: i32, %arg3: memref<1x128x32xf32, #tpu.memory_space<vmem>>, %arg4: memref<4x32x24xf32, #tpu.memory_space<vmem>>, %arg5: memref<1x1x128x8xf32, #tpu.memory_space<vmem>>, %arg6: memref<1x1x128x8xf32, #tpu.memory_space<vmem>>, %arg7: memref<1x1x128x8xf32, #tpu.memory_space<vmem>>) attributes {dimension_semantics = [#tpu.dimension_semantics<parallel>, #tpu.dimension_semantics<parallel>, #tpu.dimension_semantics<parallel>], iteration_bounds = array<i64: 2, 1, 4>, scalar_prefetch = 0 : i64, scratch_operands = 0 : i64, tpu.core_type = #tpu.core_type<tc>, window_params = [{transform_indices = @transform_0, window_bounds = array<i64: 1, 128, 32>}, {pipeline_mode = #tpu.pipeline_mode<synchronous>, transform_indices = @transform_1, window_bounds = array<i64: 4, 32, 24>}, {transform_indices = @transform_2, window_bounds = array<i64: 1, 1, 128, 8>}, {transform_indices = @transform_3, window_bounds = array<i64: 1, 1, 128, 8>}, {transform_indices = @transform_4, window_bounds = array<i64: 1, 1, 128, 8>}]} {
    %c0 = arith.constant 0 : index
    %c0_0 = arith.constant 0 : index
    %c0_1 = arith.constant 0 : index
    %0 = vector.load %arg3[%c0, %c0_0, %c0_1] : memref<1x128x32xf32, #tpu.memory_space<vmem>>, vector<1x128x32xf32>
    %1 = vector.shape_cast %0 : vector<1x128x32xf32> to vector<128x32xf32>
    %2 = arith.index_cast %arg2 : i32 to index
    %c0_2 = arith.constant 0 : index
    %c0_3 = arith.constant 0 : index
    %3 = vector.load %arg4[%2, %c0_2, %c0_3] : memref<4x32x24xf32, #tpu.memory_space<vmem>>, vector<1x32x24xf32>
    %4 = vector.shape_cast %3 : vector<1x32x24xf32> to vector<32x24xf32>
    %cst = arith.constant dense<0.000000e+00> : vector<128x24xf32>
    %5 = tpu.matmul %1, %4, %cst {dimension_numbers = #tpu.dot_dimension_numbers<[1], [0], [0], [1], [0, 0, 1, 1], [], []>} : vector<128x32xf32>, vector<32x24xf32>, vector<128x24xf32> -> vector<128x24xf32>
    %6 = vector.extract_strided_slice %5 {offsets = [0, 0], sizes = [128, 8], strides = [1, 1]} : vector<128x24xf32> to vector<128x8xf32>
    %c0_4 = arith.constant 0 : index
    %c0_5 = arith.constant 0 : index
    %c0_6 = arith.constant 0 : index
    %c0_7 = arith.constant 0 : index
    %7 = vector.load %arg5[%c0_4, %c0_5, %c0_6, %c0_7] : memref<1x1x128x8xf32, #tpu.memory_space<vmem>>, vector<1x1x128x8xf32>
    %8 = vector.shape_cast %7 : vector<1x1x128x8xf32> to vector<128x8xf32>
    %9 = vector.shape_cast %6 : vector<128x8xf32> to vector<1x1x128x8xf32>
    tpu.vector_store %arg5[%c0_4, %c0_5, %c0_6, %c0_7], %9 {strides = array<i32>} : memref<1x1x128x8xf32, #tpu.memory_space<vmem>>, vector<1x1x128x8xf32>,
    %10 = vector.extract_strided_slice %5 {offsets = [0, 8], sizes = [128, 8], strides = [1, 1]} : vector<128x24xf32> to vector<128x8xf32>
    %c0_8 = arith.constant 0 : index
    %c0_9 = arith.constant 0 : index
    %c0_10 = arith.constant 0 : index
    %c0_11 = arith.constant 0 : index
    %11 = vector.load %arg6[%c0_8, %c0_9, %c0_10, %c0_11] : memref<1x1x128x8xf32, #tpu.memory_space<vmem>>, vector<1x1x128x8xf32>
    %12 = vector.shape_cast %11 : vector<1x1x128x8xf32> to vector<128x8xf32>
    %13 = vector.shape_cast %10 : vector<128x8xf32> to vector<1x1x128x8xf32>
    tpu.vector_store %arg6[%c0_8, %c0_9, %c0_10, %c0_11], %13 {strides = array<i32>} : memref<1x1x128x8xf32, #tpu.memory_space<vmem>>, vector<1x1x128x8xf32>,
    %14 = vector.extract_strided_slice %5 {offsets = [0, 16], sizes = [128, 8], strides = [1, 1]} : vector<128x24xf32> to vector<128x8xf32>
    %c0_12 = arith.constant 0 : index
    %c0_13 = arith.constant 0 : index
    %c0_14 = arith.constant 0 : index
    %c0_15 = arith.constant 0 : index
    %15 = vector.load %arg7[%c0_12, %c0_13, %c0_14, %c0_15] : memref<1x1x128x8xf32, #tpu.memory_space<vmem>>, vector<1x1x128x8xf32>
    %16 = vector.shape_cast %15 : vector<1x1x128x8xf32> to vector<128x8xf32>
    %17 = vector.shape_cast %14 : vector<128x8xf32> to vector<1x1x128x8xf32>
    tpu.vector_store %arg7[%c0_12, %c0_13, %c0_14, %c0_15], %17 {strides = array<i32>} : memref<1x1x128x8xf32, #tpu.memory_space<vmem>>, vector<1x1x128x8xf32>,
    return
  }
  func.func @transform_0(%arg0: i32, %arg1: i32, %arg2: i32) -> (i32, i32, i32) {
    %c0_i32 = arith.constant 0 : i32
    %c0_i32_0 = arith.constant 0 : i32
    return %arg0, %arg1, %c0_i32 : i32, i32, i32
  }
  func.func @transform_1(%arg0: i32, %arg1: i32, %arg2: i32) -> (i32, i32, i32) {
    %c0_i32 = arith.constant 0 : i32
    %c0_i32_0 = arith.constant 0 : i32
    %c0_i32_1 = arith.constant 0 : i32
    %c0_i32_2 = arith.constant 0 : i32
    return %c0_i32, %c0_i32_0, %c0_i32_1 : i32, i32, i32
  }
  func.func @transform_2(%arg0: i32, %arg1: i32, %arg2: i32) -> (i32, i32, i32, i32) {
    %c0_i32 = arith.constant 0 : i32
    %c0_i32_0 = arith.constant 0 : i32
    return %arg0, %arg2, %arg1, %c0_i32 : i32, i32, i32, i32
  }
  func.func @transform_3(%arg0: i32, %arg1: i32, %arg2: i32) -> (i32, i32, i32, i32) {
    %c0_i32 = arith.constant 0 : i32
    %c0_i32_0 = arith.constant 0 : i32
    return %arg0, %arg2, %arg1, %c0_i32 : i32, i32, i32, i32
  }
  func.func @transform_4(%arg0: i32, %arg1: i32, %arg2: i32) -> (i32, i32, i32, i32) {
    %c0_i32 = arith.constant 0 : i32
    %c0_i32_0 = arith.constant 0 : i32
    return %arg0, %arg2, %arg1, %c0_i32 : i32, i32, i32, i32
  }
}

</mosaic_0001>

<bundles_post_ra>
// kernel: tpu_custom_call.1
= control target key start
LH: loop header
LB: loop body
LE: loop exit
PB: predicated region body
PF: predicated region fallthrough
CT: control target
= control target key end

     0   :  { %s1150_s15 = smov 0   ;;  %s1152_s16 = smov 0   ;;  %s1392_s0 = inlined_call_operand.vmem [shape: f32[2,128,32], index: 0, kind: input, shape index: {}]   ;;  %s1393_s1 = inlined_call_operand.vmem [shape: f32[4,32,24], index: 1, kind: input, shape index: {}]   ;;  %s1394_s2 = inlined_call_operand.vmem [shape: f32[2,4,128,8], index: 2, kind: output, shape index: {0}]   ;;  %s1395_s3 = inlined_call_operand.vmem [shape: f32[2,4,128,8], index: 3, kind: output, shape index: {1}]   ;;  %s1396_s4 = inlined_call_operand.vmem [shape: f32[2,4,128,8], index: 4, kind: output, shape index: {2}]  }
   0x1   :  { %s1154_s17 = smov 0   ;;  %s1156_s18 = smov 0  }
   0x2   :  { %s1158_s19 = smov 0  }
   0x3 LB: > { %s27_s20 = sadd.s32 1, %s1113_s17  ;;  %s34_s21 = sadd.s32 1, %s1117_s18  ;;  %s1121_s19 = sphi %s1158_s19, %s15_s19   ;;  %s1117_s18 = sphi %s1156_s18, %s1400_s18   ;;  %s1113_s17 = sphi %s1154_s17, %s1399_s17   ;;  %s1109_s16 = sphi %s1152_s16, %s1398_s16   ;;  %s1105_s15 = sphi %s1150_s15, %s1397_s15  }
   0x4   : > { %p28_p0 = scmp.ge.s32.totalorder %s27_s20, 4  ;;  %p945_p1 = scmp.ge.s32.totalorder %s1121_s19, 1 }
   0x5   : > { %p205_p2 = scmp.lt.s32.totalorder %s1121_s19, 9 }
   0x6   : > { %s1402_s20 = smov (%p28_p0, %s27_s20), 0  ;;  %s1404_s21 = smov (!%p28_p0, %s34_s21), %s1117_s18 }
   0x7   : > { %p206_p3 = pnand %p945_p1, %p205_p2  ;;  %p36_p4 = scmp.ge.s32.totalorder %s1404_s21, 2 }
   0x8   : > { %s957_s22 = sshll.u32 (!%p206_p3), %s1105_s15, 5  ;;  %p270_p5 = scmp.lt.s32.totalorder (!%p206_p3), %s1109_s16, 1  ;;  %vm343_vm0 = vcmask (!%p206_p3), 261120   ;;  %vm537_vm1 = vcmask (!%p206_p3), 64512  }
   0x9   : > { %s1406_s21 = smov (%p36_p4, %s1404_s21), 0  ;;  %209 = sbr.rel (%p206_p3) target bundleno = 410 (0x19a), region = 28 }
   0xa   : > { %s338_s25 = scalar_lea.vmem (!%p206_p3), %s1393_s1, %s957_s22  ;;  %p282_p6 = scmp.lt.s32.totalorder (!%p206_p3), %s1105_s15, 3 }
   0xb   : > { %v339_v0 = vld [vmem:[%s338_s25] sm:$0xff] (!%p206_p3)  ;;  %v340_v1 = vld [vmem:[%s338_s25 + $0x8] sm:$0xff] (!%p206_p3)  ;;  %v341_v2 = vld [vmem:[%s338_s25 + $0x10] sm:$0xff] (!%p206_p3)  ;;  %s1123_s11 = smov (!%p206_p3), 120   ;;  %s1124_s12 = smov (!%p206_p3), 112  }
   0xc   : > { %v1029_v3 = vpack.c.bf16 (!%p206_p3), %v340_v1, %v339_v0  ;;  %v342_v4 = vld [vmem:[%s338_s25 + $0x18] sm:$0xff] (!%p206_p3) }
   0xd   : > { %v1033_v5 = vpack.c.bf16 (!%p206_p3), %v342_v4, %v341_v2 }
   0xe   : > { %1030 = vmatprep.subr.bf16.mxu0 (!%p206_p3), %v1029_v3  ;;  %1037 = vmatprep.subr.bf16.mxu1 (!%p206_p3), %v1029_v3 }
   0xf   : > { %1032 = vmatpush3.bf16.msra.mxu0 (!%p206_p3), %v1029_v3  ;;  %1039 = vmatpush3.bf16.msra.mxu1 (!%p206_p3), %v1029_v3 }
  0x10   : > { %s1408_s16 = smov (!%p270_p5, %s1109_s16), 1  ;;  %1034 = vmatprep.subr.bf16.mxu0 %v1033_v5  ;;  %1038 = vmatprep.subr.bf16.mxu1 %v1033_v5  ;;  %s1410_s15 = smov (!%p282_p6, %s1105_s15), 3 }
  0x11   : > { %s976_s26 = sshll.u32 %s1408_s16, 7  ;;  %s948_s30 = sshll.u32 %s1410_s15, 4 }
  0x12   : > { %s1192_s29 = scalar_lea.vmem %s1392_s0, %s976_s26  ;;  %s949_s5 = sshll.u32 %s1408_s16, 6 }
  0x13   : > { %v321_v6 = vld [vmem:[%s1192_s29] sm:$0xff]  ;;  %1036 = vmatpush3.bf16.msra.mxu0 %v1033_v5  ;;  %1040 = vmatpush3.bf16.msra.mxu1 %v1033_v5  ;;  %v322_v8 = vld [vmem:[%s1192_s29 + $0x8] sm:$0xff]  ;;  %v323_v10 = vld [vmem:[%s1192_s29 + $0x10] sm:$0xff]  ;;  %s289_s6 = sadd.s32 %s949_s5, %s948_s30 }
  0x14   : > { %v329_v7 = vld [vmem:[%s1192_s29 + $0x40] sm:$0xff]  ;;  %1005 = vmatprep.mubr.msk.f32.mxu0 %vm343_vm0, %v321_v6  ;;  %v330_v9 = vld [vmem:[%s1192_s29 + $0x48] sm:$0xff]  ;;  %v331_v11 = vld [vmem:[%s1192_s29 + $0x50] sm:$0xff]  ;;  %s1229_s7 = sshll.u32 %s289_s6, 3 }
  0x15   : > { %1017 = vmatprep.mubr.msk.f32.mxu1 %vm343_vm0, %v329_v7  ;;  %v324_v12 = vld [vmem:[%s1192_s29 + $0x18] sm:$0xff]  ;;  %v325_v14 = vld [vmem:[%s1192_s29 + $0x20] sm:$0xff]  ;;  %v326_v16 = vld [vmem:[%s1192_s29 + $0x28] sm:$0xff]  ;;  %s1235_s10 = scalar_lea.vmem %s1394_s2, %s1229_s7  ;;  %s1305_s15 = scalar_lea.vmem %s1395_s3, %s1229_s7 }
  0x16   : > { %1006 = vmatmul.mubr.msk.f32.vlgmr.msra.gmra.mrb[0].mxu0 %vm343_vm0, %v322_v8  ;;  %1018 = vmatmul.mubr.msk.f32.vlgmr.msra.gmra.mrb[0].mxu1 %vm343_vm0, %v330_v9  ;;  %v332_v13 = vld [vmem:[%s1192_s29 + $0x58] sm:$0xff]  ;;  %v333_v15 = vld [vmem:[%s1192_s29 + $0x60] sm:$0xff]  ;;  %v334_v17 = vld [vmem:[%s1192_s29 + $0x68] sm:$0xff]  ;;  %s1315_s23 = scalar_lea.vmem %s1396_s4, %s1229_s7 }
  0x17   : > { %1008 = vmatprep.mubr.msk.f32.mxu0 %vm343_vm0, %v323_v10  ;;  %1020 = vmatprep.mubr.msk.f32.mxu1 %vm343_vm0, %v331_v11  ;;  %v327_v18 = vld [vmem:[%s1192_s29 + $0x30] sm:$0xff]  ;;  %v328_v20 = vld [vmem:[%s1192_s29 + $0x38] sm:$0xff] }
  0x18   : > { %v335_v19 = vld [vmem:[%s1192_s29 + $0x70] sm:$0xff]  ;;  %v336_v21 = vld [vmem:[%s1192_s29 + $0x78] sm:$0xff] }
  0x1a   : > { %1009 = vmatmul.mubr.msk.f32.gmra.mrb[2].mxu0 %vm343_vm0, %v324_v12  ;;  %1021 = vmatmul.mubr.msk.f32.gmra.mrb[2].mxu1 %vm343_vm0, %v332_v13 }
  0x1b   : > { %1011 = vmatprep.mubr.msk.f32.mxu0 %vm343_vm0, %v325_v14  ;;  %1023 = vmatprep.mubr.msk.f32.mxu1 %vm343_vm0, %v333_v15 }
  0x1e   : > { %1012 = vmatmul.mubr.msk.f32.gmra.mrb[4].mxu0 %vm343_vm0, %v326_v16  ;;  %1024 = vmatmul.mubr.msk.f32.gmra.mrb[4].mxu1 %vm343_vm0, %v334_v17 }
  0x1f   : > { %1014 = vmatprep.mubr.msk.f32.mxu0 %vm343_vm0, %v327_v18  ;;  %1026 = vmatprep.mubr.msk.f32.mxu1 %vm343_vm0, %v335_v19 }
  0x22   : > { %1015 = vmatmul.mubr.msk.f32.gmra.mrb[6].mxu0 %vm343_vm0, %v328_v20  ;;  %1027 = vmatmul.mubr.msk.f32.gmra.mrb[6].mxu1 %vm343_vm0, %v336_v21 }
  0xe9   : > { %v1007_v22 = vpop.f32.mrb[0].mxu0  ;;  %v1019_v23 = vpop.f32.mrb[0].mxu1 }
  0xea   : > { %539 = vst.msk [vmem:[%s1235_s10 + $0x8] sm:$0xff] %vm537_vm1, %v1007_v22  ;;  %547 = vst.msk [vmem:[%s1235_s10 + $0x48] sm:$0xff] %vm537_vm1, %v1019_v23  ;;  %588 = vrot.lane.b32.xlu1 %v1019_v23, %s1123_s11  ;;  %v498_v24 = vpop.f32.mrb[1].mxu1  ;;  %572 = vrot.lane.b32.xlu0 %v1007_v22, %s1123_s11  ;;  %v458_v25 = vpop.f32.mrb[1].mxu0 }
  0xeb   : > { %546 = vst.msk [vmem:[%s1235_s10 + $0x40] sm:$0xff] %vm537_vm1, %v498_v24  ;;  %538 = vst.msk [vmem:[%s1235_s10] sm:$0xff] %vm537_vm1, %v458_v25 }
  0xed   : > { %v1010_v26 = vpop.f32.mrb[2].mxu0  ;;  %v1022_v27 = vpop.f32.mrb[2].mxu1 }
  0xee   : > { %636 = vrot.lane.b32.xlu1 %v1007_v22, %s1124_s12  ;;  %570 = vrot.lane.b32.xlu0 %v458_v25, %s1123_s11  ;;  %541 = vst.msk [vmem:[%s1235_s10 + $0x18] sm:$0xff] %vm537_vm1, %v1010_v26  ;;  %v468_v28 = vpop.f32.mrb[3].mxu0  ;;  %549 = vst.msk [vmem:[%s1235_s10 + $0x58] sm:$0xff] %vm537_vm1, %v1022_v27  ;;  %v508_v29 = vpop.f32.mrb[3].mxu1 }
  0xef   : > { %540 = vst.msk [vmem:[%s1235_s10 + $0x10] sm:$0xff] %vm537_vm1, %v468_v28  ;;  %548 = vst.msk [vmem:[%s1235_s10 + $0x50] sm:$0xff] %vm537_vm1, %v508_v29 }
  0xf1   : > { %v1013_v30 = vpop.f32.mrb[4].mxu0  ;;  %v1025_v31 = vpop.f32.mrb[4].mxu1 }
  0xf2   : > { %652 = vrot.lane.b32.xlu1 %v1019_v23, %s1124_s12  ;;  %586 = vrot.lane.b32.xlu0 %v498_v24, %s1123_s11  ;;  %543 = vst.msk [vmem:[%s1235_s10 + $0x28] sm:$0xff] %vm537_vm1, %v1013_v30  ;;  %v478_v32 = vpop.f32.mrb[5].mxu0  ;;  %551 = vst.msk [vmem:[%s1235_s10 + $0x68] sm:$0xff] %vm537_vm1, %v1025_v31  ;;  %v518_v33 = vpop.f32.mrb[5].mxu1 }
  0xf3   : > { %542 = vst.msk [vmem:[%s1235_s10 + $0x20] sm:$0xff] %vm537_vm1, %v478_v32  ;;  %550 = vst.msk [vmem:[%s1235_s10 + $0x60] sm:$0xff] %vm537_vm1, %v518_v33 }
  0xf5   : > { %v1016_v34 = vpop.f32.mrb[6].mxu0  ;;  %v1028_v35 = vpop.f32.mrb[6].mxu1 }
  0xf6   : > { %634 = vrot.lane.b32.xlu0 %v458_v25, %s1124_s12  ;;  %576 = vrot.lane.b32.xlu1 %v1010_v26, %s1123_s11  ;;  %545 = vst.msk [vmem:[%s1235_s10 + $0x38] sm:$0xff] %vm537_vm1, %v1016_v34  ;;  %v488_v36 = vpop.f32.mrb[7].mxu0  ;;  %553 = vst.msk [vmem:[%s1235_s10 + $0x78] sm:$0xff] %vm537_vm1, %v1028_v35  ;;  %v528_v37 = vpop.f32.mrb[7].mxu1 }
  0xf7   : > { %544 = vst.msk [vmem:[%s1235_s10 + $0x30] sm:$0xff] %vm537_vm1, %v488_v36  ;;  %552 = vst.msk [vmem:[%s1235_s10 + $0x70] sm:$0xff] %vm537_vm1, %v528_v37 }
  0xfa   : > { %650 = vrot.lane.b32.xlu0 %v498_v24, %s1124_s12  ;;  %592 = vrot.lane.b32.xlu1 %v1022_v27, %s1123_s11 }
  0xfe   : > { %590 = vrot.lane.b32.xlu0 %v508_v29, %s1123_s11  ;;  %640 = vrot.lane.b32.xlu1 %v1010_v26, %s1124_s12 }
 0x102   : > { %656 = vrot.lane.b32.xlu1 %v1022_v27, %s1124_s12  ;;  %638 = vrot.lane.b32.xlu0 %v468_v28, %s1124_s12 }
 0x106   : > { %654 = vrot.lane.b32.xlu0 %v508_v29, %s1124_s12  ;;  %574 = vrot.lane.b32.xlu1 %v468_v28, %s1123_s11 }
 0x10a   : > { %580 = vrot.lane.b32.xlu1 %v1013_v30, %s1123_s11  ;;  %578 = vrot.lane.b32.xlu0 %v478_v32, %s1123_s11 }
 0x10e   : > { %596 = vrot.lane.b32.xlu1 %v1025_v31, %s1123_s11  ;;  %594 = vrot.lane.b32.xlu0 %v518_v33, %s1123_s11 }
 0x112   : > { %644 = vrot.lane.b32.xlu1 %v1013_v30, %s1124_s12  ;;  %642 = vrot.lane.b32.xlu0 %v478_v32, %s1124_s12 }
 0x116   : > { %660 = vrot.lane.b32.xlu1 %v1025_v31, %s1124_s12  ;;  %658 = vrot.lane.b32.xlu0 %v518_v33, %s1124_s12 }
 0x11a   : > { %584 = vrot.lane.b32.xlu1 %v1016_v34, %s1123_s11  ;;  %582 = vrot.lane.b32.xlu0 %v488_v36, %s1123_s11 }
 0x11e   : > { %600 = vrot.lane.b32.xlu1 %v1028_v35, %s1123_s11  ;;  %598 = vrot.lane.b32.xlu0 %v528_v37, %s1123_s11 }
 0x122   : > { %648 = vrot.lane.b32.xlu1 %v1016_v34, %s1124_s12  ;;  %646 = vrot.lane.b32.xlu0 %v488_v36, %s1124_s12 }
 0x126   : > { %664 = vrot.lane.b32.xlu1 %v1028_v35, %s1124_s12  ;;  %662 = vrot.lane.b32.xlu0 %v528_v37, %s1124_s12 }
 0x15c   : > { %v589_v38 = vpop.permute.xlu1 %588  ;;  %v573_v39 = vpop.permute.xlu0 %572 }
 0x15d   : > { %627 = vst.msk [vmem:[%s1305_s15 + $0x48] sm:$0xff] %vm537_vm1, %v589_v38  ;;  %619 = vst.msk [vmem:[%s1305_s15 + $0x8] sm:$0xff] %vm537_vm1, %v573_v39 }
 0x160   : > { %v637_v40 = vpop.permute.xlu1 %636  ;;  %v571_v41 = vpop.permute.xlu0 %570 }
 0x161   : > { %683 = vst.msk [vmem:[%s1315_s23 + $0x8] sm:$0xff] %vm537_vm1, %v637_v40  ;;  %618 = vst.msk [vmem:[%s1305_s15] sm:$0xff] %vm537_vm1, %v571_v41 }
 0x164   : > { %v653_v42 = vpop.permute.xlu1 %652  ;;  %v587_v43 = vpop.permute.xlu0 %586 }
 0x165   : > { %691 = vst.msk [vmem:[%s1315_s23 + $0x48] sm:$0xff] %vm537_vm1, %v653_v42  ;;  %626 = vst.msk [vmem:[%s1305_s15 + $0x40] sm:$0xff] %vm537_vm1, %v587_v43 }
 0x168   : > { %v635_v44 = vpop.permute.xlu0 %634  ;;  %v577_v45 = vpop.permute.xlu1 %576 }
 0x169   : > { %682 = vst.msk [vmem:[%s1315_s23] sm:$0xff] %vm537_vm1, %v635_v44  ;;  %621 = vst.msk [vmem:[%s1305_s15 + $0x18] sm:$0xff] %vm537_vm1, %v577_v45 }
 0x16c   : > { %v651_v46 = vpop.permute.xlu0 %650  ;;  %v593_v47 = vpop.permute.xlu1 %592 }
 0x16d   : > { %690 = vst.msk [vmem:[%s1315_s23 + $0x40] sm:$0xff] %vm537_vm1, %v651_v46  ;;  %629 = vst.msk [vmem:[%s1305_s15 + $0x58] sm:$0xff] %vm537_vm1, %v593_v47 }
 0x170   : > { %v591_v48 = vpop.permute.xlu0 %590  ;;  %v641_v49 = vpop.permute.xlu1 %640 }
 0x171   : > { %628 = vst.msk [vmem:[%s1305_s15 + $0x50] sm:$0xff] %vm537_vm1, %v591_v48  ;;  %685 = vst.msk [vmem:[%s1315_s23 + $0x18] sm:$0xff] %vm537_vm1, %v641_v49 }
 0x174   : > { %v657_v50 = vpop.permute.xlu1 %656  ;;  %v639_v51 = vpop.permute.xlu0 %638 }
 0x175   : > { %693 = vst.msk [vmem:[%s1315_s23 + $0x58] sm:$0xff] %vm537_vm1, %v657_v50  ;;  %684 = vst.msk [vmem:[%s1315_s23 + $0x10] sm:$0xff] %vm537_vm1, %v639_v51 }
 0x178   : > { %v655_v52 = vpop.permute.xlu0 %654  ;;  %v575_v53 = vpop.permute.xlu1 %574 }
 0x179   : > { %692 = vst.msk [vmem:[%s1315_s23 + $0x50] sm:$0xff] %vm537_vm1, %v655_v52  ;;  %620 = vst.msk [vmem:[%s1305_s15 + $0x10] sm:$0xff] %vm537_vm1, %v575_v53 }
 0x17c   : > { %v581_v54 = vpop.permute.xlu1 %580  ;;  %v579_v55 = vpop.permute.xlu0 %578 }
 0x17d   : > { %623 = vst.msk [vmem:[%s1305_s15 + $0x28] sm:$0xff] %vm537_vm1, %v581_v54  ;;  %622 = vst.msk [vmem:[%s1305_s15 + $0x20] sm:$0xff] %vm537_vm1, %v579_v55 }
 0x180   : > { %v597_v56 = vpop.permute.xlu1 %596  ;;  %v595_v57 = vpop.permute.xlu0 %594 }
 0x181   : > { %631 = vst.msk [vmem:[%s1305_s15 + $0x68] sm:$0xff] %vm537_vm1, %v597_v56  ;;  %630 = vst.msk [vmem:[%s1305_s15 + $0x60] sm:$0xff] %vm537_vm1, %v595_v57 }
 0x184   : > { %v645_v58 = vpop.permute.xlu1 %644  ;;  %v643_v59 = vpop.permute.xlu0 %642 }
 0x185   : > { %687 = vst.msk [vmem:[%s1315_s23 + $0x28] sm:$0xff] %vm537_vm1, %v645_v58  ;;  %686 = vst.msk [vmem:[%s1315_s23 + $0x20] sm:$0xff] %vm537_vm1, %v643_v59 }
 0x188   : > { %v661_v60 = vpop.permute.xlu1 %660  ;;  %v659_v61 = vpop.permute.xlu0 %658 }
 0x189   : > { %695 = vst.msk [vmem:[%s1315_s23 + $0x68] sm:$0xff] %vm537_vm1, %v661_v60  ;;  %694 = vst.msk [vmem:[%s1315_s23 + $0x60] sm:$0xff] %vm537_vm1, %v659_v61 }
 0x18c   : > { %v585_v62 = vpop.permute.xlu1 %584  ;;  %v583_v63 = vpop.permute.xlu0 %582 }
 0x18d   : > { %625 = vst.msk [vmem:[%s1305_s15 + $0x38] sm:$0xff] %vm537_vm1, %v585_v62  ;;  %624 = vst.msk [vmem:[%s1305_s15 + $0x30] sm:$0xff] %vm537_vm1, %v583_v63 }
 0x190   : > { %v601_v0 = vpop.permute.xlu1 %600  ;;  %v599_v1 = vpop.permute.xlu0 %598 }
 0x191   : > { %633 = vst.msk [vmem:[%s1305_s15 + $0x78] sm:$0xff] %vm537_vm1, %v601_v0  ;;  %632 = vst.msk [vmem:[%s1305_s15 + $0x70] sm:$0xff] %vm537_vm1, %v599_v1 }
 0x194   : > { %v649_v2 = vpop.permute.xlu1 %648  ;;  %v647_v3 = vpop.permute.xlu0 %646 }
 0x195   : > { %689 = vst.msk [vmem:[%s1315_s23 + $0x38] sm:$0xff] %vm537_vm1, %v649_v2  ;;  %688 = vst.msk [vmem:[%s1315_s23 + $0x30] sm:$0xff] %vm537_vm1, %v647_v3 }
 0x198   : > { %v665_v4 = vpop.permute.xlu1 %664  ;;  %v663_v5 = vpop.permute.xlu0 %662 }
 0x199   : > { %697 = vst.msk [vmem:[%s1315_s23 + $0x78] sm:$0xff] %vm537_vm1, %v665_v4  ;;  %696 = vst.msk [vmem:[%s1315_s23 + $0x70] sm:$0xff] %vm537_vm1, %v663_v5 }
 0x19a PF: > { %s15_s19 = sadd.s32 1, %s1121_s19   ;;  %s1397_s15 = smov %s1113_s17 }
 0x19b   : > { %p12_p7 = scmp.ge.s32.totalorder %s15_s19, 10   ;;  %s1398_s16 = smov %s1117_s18 }
 0x19c   : > { %s1399_s17 = smov %s1402_s20  ;;  %s1400_s18 = smov %s1406_s21 }
 0x19d   :  { %14 = sbr.rel (!%p12_p7) target bundleno = 3 (0x3), region = 83 }

</bundles_post_ra>
